<compile_context>
chip_gen: v7x
topology: tpu7x:2x2x1
jax: 0.10.0
libtpu: 0.0.40
codegen_flags: <defaults>
</compile_context>

<pallas_src>
import functools

import jax
import jax.numpy as jnp
from jax.experimental import pallas as pl
from jax.experimental.pallas import tpu as pltpu


def _sigmoid(x):
    # sigmoid(x) == 0.5 * tanh(0.5 * x) + 0.5 : a single EUP transcendental
    # (its own VLIW slot) instead of exp + add + divide on the VALU.
    return 0.5 * jnp.tanh(0.5 * x) + 0.5


def _affine(w_ref, b_ref, x):
    """W @ x + b in feature-major form (batch on the lane axis), f32 accum."""
    w = w_ref[...]
    # Feed the MXU bf16 operands directly when weights are bf16 (no f32
    # round-trip of the activation); otherwise keep f32.
    rhs = x.astype(jnp.bfloat16) if w.dtype == jnp.bfloat16 else x.astype(jnp.float32)
    acc = jnp.dot(w, rhs, preferred_element_type=jnp.float32)
    return acc + b_ref[...].astype(jnp.float32)


def _head_kernel(x_ref, w1_ref, b1_ref, w2a_ref, b2a_ref, w2b_ref, b2b_ref,
                 wc_ref, bc_ref, o_ref):
    """Fused HandcraftedFeatureExtractionModule + ClassificationModule.

    Feature-major: x_ref is (2*fs, tb) = [F_d^T ; V_h^T] with the batch tile
    on the 128-lane axis; o_ref is (C, tb).
    """
    fs = x_ref.shape[0] // 2
    x = x_ref[...]
    fd = x[:fs, :].astype(jnp.float32)     # deep features    F_d^T  (fs,  tb)
    vh = x[fs:, :]                         # handcrafted vec  V_h^T  (fs,  tb)

    # --- HandcraftedFeatureExtractionModule ---
    h = _sigmoid(_affine(w1_ref, b1_ref, vh))          # fc1             (fs,  tb)
    z = _sigmoid(_affine(w2a_ref, b2a_ref, h))         # fc2[0..1]       (hid, tb)
    f_h = _affine(w2b_ref, b2b_ref, z) + h             # fc2[2] + resid  (fs,  tb)

    # --- ClassificationModule: Linear(Sigmoid(Dropout(concat([F_d, F_h])))) ---
    # TODO(synk): training-mode Dropout(0.3) would need pltpu.prng_seed /
    #             pltpu.prng_random_bits; eval/inference semantics == identity.
    # In-vreg sublane concat (27+27 rows) -> ONE dot against the full (C, 2*fs)
    # classifier weight (pre-split undone; saves one MXU pass per tile).
    s = jnp.concatenate([_sigmoid(fd), _sigmoid(f_h)], axis=0)    # (2*fs, tb)
    o_ref[...] = _affine(wc_ref, bc_ref, s).astype(o_ref.dtype)   # (C,    tb)


_PARAM_ORDER = ("w1", "b1", "w2a", "b2a", "w2b", "b2b", "wc", "bc")


@functools.partial(jax.jit, static_argnames=("batch_tile", "single_shot_rows"))
def tprnet_head_forward(f_d, v_h, params, *, batch_tile=2048, single_shot_rows=512):
    """out = Classifier(concat([F_d, Handcrafted(V_h)], axis=1)).

    f_d   : (B, feature_size)  deep features (ResNet backbone output)
    v_h   : (B, feature_size)  handcrafted feature vector
    params: dict of (out, in) weights and (out, 1) biases (PyTorch orientation).
    """
    assert batch_tile % 128 == 0, "batch_tile must be a multiple of 128 lanes"
    B, fs = v_h.shape
    C = params["bc"].shape[0]

    # Feature-major layout plumbing: one fused activation stream (2*fs, B),
    # batch on the lane axis.  (Cheap wrapper-side transpose of (B, 27).)
    x = jnp.concatenate([f_d, v_h], axis=1).T                     # (2*fs, B)
    args = (x,) + tuple(params[k] for k in _PARAM_ORDER)
    out_shape = jax.ShapeDtypeStruct((C, B), f_d.dtype)

    if B <= single_shot_rows:
        # Single-shot path: no grid -> no per-step pipeline prologue/epilogue;
        # every operand lives whole in VMEM.
        vmem = pl.BlockSpec(memory_space=pltpu.MemorySpace.VMEM)
        out_t = pl.pallas_call(
            _head_kernel,
            out_shape=out_shape,
            in_specs=[vmem] * len(args),
            out_specs=vmem,
        )(*args)
        return out_t.T

    # Batch-tiled path: tile the lane (batch) axis.  Guarantee >=2 grid steps
    # so the "parallel" axis can shard across both TensorCores on v7x, while
    # 1-2K-lane tiles amortize the ~0.35 us/step pipeline overhead.  VMEM per
    # tile is ~2-3 MiB double-buffered, comfortably under v5e's 16 MiB scoped
    # default and v7x's 32 MiB / 64 MiB physical ceiling.
    tb = min(batch_tile, 128 * pl.cdiv(pl.cdiv(B, 2), 128))
    tb = max(tb, 128)
    lane = lambda i: (0, i)       # activations / output stream along lanes
    rep = lambda i: (0, 0)        # weights stay VMEM-resident across the grid
    weight_specs = [pl.BlockSpec(params[k].shape, rep) for k in _PARAM_ORDER]
    out_t = pl.pallas_call(
        _head_kernel,
        out_shape=out_shape,
        grid=(pl.cdiv(B, tb),),
        in_specs=[pl.BlockSpec((2 * fs, tb), lane)] + weight_specs,
        out_specs=pl.BlockSpec((C, tb), lane),
        compiler_params=pltpu.CompilerParams(
            dimension_semantics=("parallel",)),
    )(*args)
    return out_t.T


def init_params(key, feature_size=27, num_classes=6, dtype=jnp.float32):
    """Deterministic init mimicking nn.Linear defaults (uniform +-1/sqrt(fan_in)).
    Weights stored in PyTorch (out, in) orientation; biases as (out, 1).
    The classifier weight is a single (C, 2*fs) matrix (no pre-split)."""
    fs, hid, C = feature_size, 120, num_classes
    ks = jax.random.split(key, 8)

    def linear(kw, kb, fan_in, fan_out):
        bound = 1.0 / (fan_in ** 0.5)
        w = jax.random.uniform(kw, (fan_out, fan_in), dtype, -bound, bound)
        b = jax.random.uniform(kb, (fan_out, 1), dtype, -bound, bound)
        return w, b

    w1, b1 = linear(ks[0], ks[1], fs, fs)          # handcrafted fc1
    w2a, b2a = linear(ks[2], ks[3], fs, hid)       # handcrafted fc2[0]
    w2b, b2b = linear(ks[4], ks[5], hid, fs)       # handcrafted fc2[2]
    wc, bc = linear(ks[6], ks[7], 2 * fs, C)       # classifier Linear(2*fs, C)
    return dict(w1=w1, b1=b1, w2a=w2a, b2a=b2a, w2b=w2b, b2b=b2b, wc=wc, bc=bc)


def ref_forward(f_d, v_h, p):
    """Pure-JAX reference (eval-mode dropout = identity), batch-major math."""
    h = jax.nn.sigmoid(v_h @ p["w1"].T + p["b1"].T)
    f_h = (jax.nn.sigmoid(h @ p["w2a"].T + p["b2a"].T) @ p["w2b"].T + p["b2b"].T) + h
    f_c = jnp.concatenate([f_d, f_h], axis=1)
    return jax.nn.sigmoid(f_c) @ p["wc"].T + p["bc"].T


if __name__ == "__main__":
    key = jax.random.PRNGKey(0)
    k_fd, k_vh, k_p, k_fd2, k_vh2 = jax.random.split(key, 5)

    feature_size, num_classes = 27, 6
    params = init_params(k_p, feature_size, num_classes)

    # Small batch -> single-shot (no-grid, fully VMEM-resident) path.
    B = 8
    f_d = jax.random.normal(k_fd, (B, feature_size), jnp.float32)
    v_h = jax.random.normal(k_vh, (B, feature_size), jnp.float32)
    out = jax.block_until_ready(tprnet_head_forward(f_d, v_h, params))
    ref = ref_forward(f_d, v_h, params)
    assert out.shape == (B, num_classes)
    assert jnp.allclose(out, ref, atol=5e-4, rtol=5e-4), \
        float(jnp.max(jnp.abs(out - ref)))

    # Larger batch -> feature-major batch-tiled path (>=2 "parallel" grid steps).
    B2 = 1024
    f_d2 = jax.random.normal(k_fd2, (B2, feature_size), jnp.float32)
    v_h2 = jax.random.normal(k_vh2, (B2, feature_size), jnp.float32)
    out2 = jax.block_until_ready(tprnet_head_forward(f_d2, v_h2, params))
    ref2 = ref_forward(f_d2, v_h2, params)
    assert out2.shape == (B2, num_classes)
    assert jnp.allclose(out2, ref2, atol=5e-4, rtol=5e-4), \
        float(jnp.max(jnp.abs(out2 - ref2)))

    print("KERNEL_OK")
</pallas_src>

<mosaic_0001>
module attributes {stable_mosaic.version = 11 : i64} {
  func.func @_head_kernel(%arg0: memref<54x8xf32, #tpu.memory_space<vmem>>, %arg1: memref<27x27xf32, #tpu.memory_space<vmem>>, %arg2: memref<27x1xf32, #tpu.memory_space<vmem>>, %arg3: memref<120x27xf32, #tpu.memory_space<vmem>>, %arg4: memref<120x1xf32, #tpu.memory_space<vmem>>, %arg5: memref<27x120xf32, #tpu.memory_space<vmem>>, %arg6: memref<27x1xf32, #tpu.memory_space<vmem>>, %arg7: memref<6x54xf32, #tpu.memory_space<vmem>>, %arg8: memref<6x1xf32, #tpu.memory_space<vmem>>, %arg9: memref<6x8xf32, #tpu.memory_space<vmem>>) attributes {dimension_semantics = [], scalar_prefetch = 0 : i64, scratch_operands = 0 : i64, tpu.core_type = #tpu.core_type<tc>} {
    %c0 = arith.constant 0 : index
    %c0_0 = arith.constant 0 : index
    %0 = vector.load %arg0[%c0, %c0_0] : memref<54x8xf32, #tpu.memory_space<vmem>>, vector<54x8xf32>
    %1 = vector.extract_strided_slice %0 {offsets = [0, 0], sizes = [27, 8], strides = [1, 1]} : vector<54x8xf32> to vector<27x8xf32>
    %2 = vector.extract_strided_slice %0 {offsets = [27, 0], sizes = [27, 8], strides = [1, 1]} : vector<54x8xf32> to vector<27x8xf32>
    %c0_1 = arith.constant 0 : index
    %c0_2 = arith.constant 0 : index
    %3 = vector.load %arg1[%c0_1, %c0_2] : memref<27x27xf32, #tpu.memory_space<vmem>>, vector<27x27xf32>
    %cst = arith.constant dense<0.000000e+00> : vector<27x8xf32>
    %4 = tpu.matmul %3, %2, %cst {dimension_numbers = #tpu.dot_dimension_numbers<[1], [0], [0], [1], [0, 0, 1, 1], [], []>} : vector<27x27xf32>, vector<27x8xf32>, vector<27x8xf32> -> vector<27x8xf32>
    %c0_3 = arith.constant 0 : index
    %c0_4 = arith.constant 0 : index
    %5 = vector.load %arg2[%c0_3, %c0_4] : memref<27x1xf32, #tpu.memory_space<vmem>>, vector<27x1xf32>
    %6 = vector.broadcast %5 : vector<27x1xf32> to vector<27x8xf32>
    %7 = arith.addf %4, %6 : vector<27x8xf32>
    %cst_5 = arith.constant 5.000000e-01 : f32
    %8 = vector.broadcast %cst_5 : f32 to vector<27x8xf32>
    %9 = arith.mulf %8, %7 : vector<27x8xf32>
    %10 = math.tanh %9 : vector<27x8xf32>
    %cst_6 = arith.constant 5.000000e-01 : f32
    %11 = vector.broadcast %cst_6 : f32 to vector<27x8xf32>
    %12 = arith.mulf %11, %10 : vector<27x8xf32>
    %cst_7 = arith.constant 5.000000e-01 : f32
    %13 = vector.broadcast %cst_7 : f32 to vector<27x8xf32>
    %14 = arith.addf %12, %13 : vector<27x8xf32>
    %c0_8 = arith.constant 0 : index
    %c0_9 = arith.constant 0 : index
    %15 = vector.load %arg3[%c0_8, %c0_9] : memref<120x27xf32, #tpu.memory_space<vmem>>, vector<120x27xf32>
    %cst_10 = arith.constant dense<0.000000e+00> : vector<120x8xf32>
    %16 = tpu.matmul %15, %14, %cst_10 {dimension_numbers = #tpu.dot_dimension_numbers<[1], [0], [0], [1], [0, 0, 1, 1], [], []>} : vector<120x27xf32>, vector<27x8xf32>, vector<120x8xf32> -> vector<120x8xf32>
    %c0_11 = arith.constant 0 : index
    %c0_12 = arith.constant 0 : index
    %17 = vector.load %arg4[%c0_11, %c0_12] : memref<120x1xf32, #tpu.memory_space<vmem>>, vector<120x1xf32>
    %18 = vector.broadcast %17 : vector<120x1xf32> to vector<120x8xf32>
    %19 = arith.addf %16, %18 : vector<120x8xf32>
    %cst_13 = arith.constant 5.000000e-01 : f32
    %20 = vector.broadcast %cst_13 : f32 to vector<120x8xf32>
    %21 = arith.mulf %20, %19 : vector<120x8xf32>
    %22 = math.tanh %21 : vector<120x8xf32>
    %cst_14 = arith.constant 5.000000e-01 : f32
    %23 = vector.broadcast %cst_14 : f32 to vector<120x8xf32>
    %24 = arith.mulf %23, %22 : vector<120x8xf32>
    %cst_15 = arith.constant 5.000000e-01 : f32
    %25 = vector.broadcast %cst_15 : f32 to vector<120x8xf32>
    %26 = arith.addf %24, %25 : vector<120x8xf32>
    %c0_16 = arith.constant 0 : index
    %c0_17 = arith.constant 0 : index
    %27 = vector.load %arg5[%c0_16, %c0_17] : memref<27x120xf32, #tpu.memory_space<vmem>>, vector<27x120xf32>
    %cst_18 = arith.constant dense<0.000000e+00> : vector<27x8xf32>
    %28 = tpu.matmul %27, %26, %cst_18 {dimension_numbers = #tpu.dot_dimension_numbers<[1], [0], [0], [1], [0, 0, 1, 1], [], []>} : vector<27x120xf32>, vector<120x8xf32>, vector<27x8xf32> -> vector<27x8xf32>
    %c0_19 = arith.constant 0 : index
    %c0_20 = arith.constant 0 : index
    %29 = vector.load %arg6[%c0_19, %c0_20] : memref<27x1xf32, #tpu.memory_space<vmem>>, vector<27x1xf32>
    %30 = vector.broadcast %29 : vector<27x1xf32> to vector<27x8xf32>
    %31 = arith.addf %28, %30 : vector<27x8xf32>
    %32 = arith.addf %31, %14 : vector<27x8xf32>
    %cst_21 = arith.constant 5.000000e-01 : f32
    %33 = vector.broadcast %cst_21 : f32 to vector<27x8xf32>
    %34 = arith.mulf %33, %1 : vector<27x8xf32>
    %35 = math.tanh %34 : vector<27x8xf32>
    %cst_22 = arith.constant 5.000000e-01 : f32
    %36 = vector.broadcast %cst_22 : f32 to vector<27x8xf32>
    %37 = arith.mulf %36, %35 : vector<27x8xf32>
    %cst_23 = arith.constant 5.000000e-01 : f32
    %38 = vector.broadcast %cst_23 : f32 to vector<27x8xf32>
    %39 = arith.addf %37, %38 : vector<27x8xf32>
    %cst_24 = arith.constant 5.000000e-01 : f32
    %40 = vector.broadcast %cst_24 : f32 to vector<27x8xf32>
    %41 = arith.mulf %40, %32 : vector<27x8xf32>
    %42 = math.tanh %41 : vector<27x8xf32>
    %cst_25 = arith.constant 5.000000e-01 : f32
    %43 = vector.broadcast %cst_25 : f32 to vector<27x8xf32>
    %44 = arith.mulf %43, %42 : vector<27x8xf32>
    %cst_26 = arith.constant 5.000000e-01 : f32
    %45 = vector.broadcast %cst_26 : f32 to vector<27x8xf32>
    %46 = arith.addf %44, %45 : vector<27x8xf32>
    %47 = tpu.concatenate %39, %46 in 0 : vector<27x8xf32>, vector<27x8xf32> -> vector<54x8xf32>
    %c0_27 = arith.constant 0 : index
    %c0_28 = arith.constant 0 : index
    %48 = vector.load %arg7[%c0_27, %c0_28] : memref<6x54xf32, #tpu.memory_space<vmem>>, vector<6x54xf32>
    %cst_29 = arith.constant dense<0.000000e+00> : vector<6x8xf32>
    %49 = tpu.matmul %48, %47, %cst_29 {dimension_numbers = #tpu.dot_dimension_numbers<[1], [0], [0], [1], [0, 0, 1, 1], [], []>} : vector<6x54xf32>, vector<54x8xf32>, vector<6x8xf32> -> vector<6x8xf32>
    %c0_30 = arith.constant 0 : index
    %c0_31 = arith.constant 0 : index
    %50 = vector.load %arg8[%c0_30, %c0_31] : memref<6x1xf32, #tpu.memory_space<vmem>>, vector<6x1xf32>
    %51 = vector.broadcast %50 : vector<6x1xf32> to vector<6x8xf32>
    %52 = arith.addf %49, %51 : vector<6x8xf32>
    %c0_32 = arith.constant 0 : index
    %c0_33 = arith.constant 0 : index
    %53 = vector.load %arg9[%c0_32, %c0_33] : memref<6x8xf32, #tpu.memory_space<vmem>>, vector<6x8xf32>
    tpu.vector_store %arg9[%c0_32, %c0_33], %52 {strides = array<i32>} : memref<6x8xf32, #tpu.memory_space<vmem>>, vector<6x8xf32>,
    return
  }
}

</mosaic_0001>

<bundles_post_ra>
// kernel: tprnet_head_forward.1
= control target key start
LH: loop header
LB: loop body
LE: loop exit
PB: predicated region body
PF: predicated region fallthrough
CT: control target
= control target key end

     0   :  { %vm71_vm0 = vcmask 1044480   ;;  %vm82_vm1 = vcmask 220160   ;;  %v1135_v7 = vmov 0   ;;  %vm95_vm2 = vcmask 1042432   ;;  %s1457_s0 = inlined_call_operand.vmem [shape: f32[54,8], index: 0, kind: input, shape index: {}]   ;;  %s1458_s1 = inlined_call_operand.vmem [shape: f32[27,27], index: 1, kind: input, shape index: {}]   ;;  %s1459_s2 = inlined_call_operand.vmem [shape: f32[27,1], index: 2, kind: input, shape index: {}]   ;;  %s1460_s4 = inlined_call_operand.vmem [shape: f32[120,1], index: 4, kind: input, shape index: {}]   ;;  %s1461_s6 = inlined_call_operand.vmem [shape: f32[27,1], index: 6, kind: input, shape index: {}]   ;;  %s1462_s8 = inlined_call_operand.vmem [shape: f32[6,1], index: 8, kind: input, shape index: {}]   ;;  %s1463_s3 = inlined_call_operand.vmem [shape: f32[120,27], index: 3, kind: input, shape index: {}]   ;;  %s1464_s5 = inlined_call_operand.vmem [shape: f32[27,120], index: 5, kind: input, shape index: {}]   ;;  %s1465_s7 = inlined_call_operand.vmem [shape: f32[6,54], index: 7, kind: input, shape index: {}]   ;;  %s1466_s9 = inlined_call_operand.vmem [shape: f32[6,8], index: 9, kind: output, shape index: {}]  }
   0x1   :  { %v1193_v0 = vld [vmem:[%s1457_s0 + $0x18] sm:$0xff]  ;;  %v36_v1 = vld [vmem:[%s1457_s0 + $0x20] sm:$0xff]  ;;  %v37_v2 = vld [vmem:[%s1457_s0 + $0x28] sm:$0xff]  ;;  %1079 = vset.pattern.permute.xlu0 %v1135_v7  ;;  %1080 = vset.pattern.permute.xlu1 %v1135_v7  ;;  %vm1136_vm3 = vmmov 1   ;;  %v1137_v43 = vmov 0.0|0.0   ;;  %vm1138_vm5 = vmmov 0  }
   0x2   :  { %v38_v3 = vld [vmem:[%s1457_s0 + $0x30] sm:$0x3f]  ;;  %v72_v4 = vrot.slane %v1193_v0, 3  ;;  %v73_v5 = vrot.slane %v36_v1, 3  ;;  %v75_v6 = vrot.slane %v37_v2, 3  ;;  %v39_v9 = vld [vmem:[%s1458_s1] sm:$0xff]  ;;  %vm1219_vm4 = vmpackc.low %vm95_vm2, %vm1136_vm3  ;;  %1030 = vmatprep.subr.bf16.mxu1 %v1137_v43 }
   0x3   :  { %v77_v8 = vrot.slane %v38_v3, 3  ;;  %908 = vmatprep.mubr.msk.f32.mxu0 %vm82_vm1, %v39_v9  ;;  %v43_v12 = vld [vmem:[%s1459_s2] sm:$0xff]  ;;  %v45_v13 = vld [vmem:[%s1459_s2 + $0x10] sm:$0xff]  ;;  %v44_v18 = vld [vmem:[%s1459_s2 + $0x8] sm:$0xff]  ;;  %v1139_v44 = vmov 0.0   ;;  %vm580_vm6 = vcmask 982016  }
   0x4   :  { %v74_v10 = vsel %vm71_vm0, %v72_v4, %v73_v5  ;;  %v76_v11 = vsel %vm71_vm0, %v73_v5, %v75_v6  ;;  %49 = vperm.xlu0 %1079, %v43_v12   ;;  %59 = vperm.xlu1 %1080, %v45_v13   ;;  %v46_v19 = vld [vmem:[%s1459_s2 + $0x18] sm:$0x7]  ;;  %v214_v20 = vld [vmem:[%s1460_s4] sm:$0xff]  ;;  %v215_v21 = vld [vmem:[%s1460_s4 + $0x8] sm:$0xff]  ;;  %vm740_vm7 = vcmask 1045504   ;;  %vm736_vm8 = vcmask 441344  }
   0x5   :  { %v78_v14 = vsel %vm71_vm0, %v75_v6, %v77_v8  ;;  %v1020_v15 = vpack.c.bf16 %v76_v11, %v74_v10  ;;  %v40_v22 = vld [vmem:[%s1458_s1 + $0x8] sm:$0xff]  ;;  %v41_v23 = vld [vmem:[%s1458_s1 + $0x10] sm:$0xff]  ;;  %v217_v25 = vld [vmem:[%s1460_s4 + $0x18] sm:$0xff]  ;;  %922 = vmatprep.mubr.msk.f32.mxu1 %vm1138_vm5, %v1139_v44  ;;  %vm813_vm9 = vcmask 62464  }
   0x6   :  { %v1024_v16 = vpack.c.bf16 %v77_v8, %v78_v14  ;;  %v216_v24 = vld [vmem:[%s1460_s4 + $0x10] sm:$0xff]  ;;  %v42_v26 = vld [vmem:[%s1458_s1 + $0x18] sm:$0x7]  ;;  %v218_v27 = vld [vmem:[%s1460_s4 + $0x20] sm:$0xff] }
   0x7   :  { %1021 = vmatprep.subr.bf16.mxu0 %v1020_v15  ;;  %v219_v28 = vld [vmem:[%s1460_s4 + $0x28] sm:$0xff]  ;;  %v220_v29 = vld [vmem:[%s1460_s4 + $0x30] sm:$0xff]  ;;  %v221_v30 = vld [vmem:[%s1460_s4 + $0x38] sm:$0xff] }
   0x8   :  { %1023 = vmatpush3.bf16.msra.mxu0 %v1020_v15  ;;  %54 = vperm.xlu0 %1079, %v44_v18   ;;  %v222_v31 = vld [vmem:[%s1460_s4 + $0x40] sm:$0xff]  ;;  %v223_v32 = vld [vmem:[%s1460_s4 + $0x48] sm:$0xff]  ;;  %v224_v33 = vld [vmem:[%s1460_s4 + $0x50] sm:$0xff] }
   0x9   :  { %1026 = vmatprep.subr.msk.bf16.mxu0 %vm1219_vm4, %v1024_v16  ;;  %64 = vperm.xlu1 %1080, %v46_v19   ;;  %v225_v34 = vld [vmem:[%s1460_s4 + $0x58] sm:$0xff]  ;;  %v226_v35 = vld [vmem:[%s1460_s4 + $0x60] sm:$0xff]  ;;  %v227_v36 = vld [vmem:[%s1460_s4 + $0x68] sm:$0xff] }
   0xa   :  { %v228_v37 = vld [vmem:[%s1460_s4 + $0x70] sm:$0xff]  ;;  %v556_v38 = vld [vmem:[%s1461_s6] sm:$0xff]  ;;  %v557_v39 = vld [vmem:[%s1461_s6 + $0x8] sm:$0xff] }
   0xb   :  { %v558_v40 = vld [vmem:[%s1461_s6 + $0x10] sm:$0xff]  ;;  %v559_v41 = vld [vmem:[%s1461_s6 + $0x18] sm:$0x7]  ;;  %v730_v42 = vld [vmem:[%s1462_s8] sm:$0x3f] }
   0xc   :  { %1029 = vmatpush3.bf16.msk.msra.mxu0 %vm1219_vm4, %v1024_v16  ;;  %231 = vperm.xlu0 %1079, %v214_v20   ;;  %v199_v12 = vld [vmem:[%s1463_s3] sm:$0xff]  ;;  %v200_v13 = vld [vmem:[%s1463_s3 + $0x8] sm:$0xff]  ;;  %v201_v14 = vld [vmem:[%s1463_s3 + $0x10] sm:$0xff] }
   0xd   :  { %236 = vperm.xlu1 %1080, %v215_v21   ;;  %v202_v15 = vld [vmem:[%s1463_s3 + $0x18] sm:$0xff]  ;;  %v203_v16 = vld [vmem:[%s1463_s3 + $0x20] sm:$0xff]  ;;  %v204_v17 = vld [vmem:[%s1463_s3 + $0x28] sm:$0xff] }
   0xe   :  { %v205_v18 = vld [vmem:[%s1463_s3 + $0x30] sm:$0xff]  ;;  %v206_v19 = vld [vmem:[%s1463_s3 + $0x38] sm:$0xff]  ;;  %v207_v20 = vld [vmem:[%s1463_s3 + $0x40] sm:$0xff] }
   0xf   :  { %909 = vmatmul.mubr.msk.f32.vlgmr.msra.gmra.mrb[0].mxu0 %vm82_vm1, %v40_v22  ;;  %v208_v21 = vld [vmem:[%s1463_s3 + $0x48] sm:$0xff]  ;;  %v209_v22 = vld [vmem:[%s1463_s3 + $0x50] sm:$0xff] }
  0x10   :  { %911 = vmatprep.mubr.msk.f32.mxu0 %vm82_vm1, %v41_v23  ;;  %241 = vperm.xlu0 %1079, %v216_v24   ;;  %v210_v23 = vld [vmem:[%s1463_s3 + $0x58] sm:$0xff]  ;;  %v211_v24 = vld [vmem:[%s1463_s3 + $0x60] sm:$0xff] }
  0x11   :  { %246 = vperm.xlu1 %1080, %v217_v25   ;;  %v212_v25 = vld [vmem:[%s1463_s3 + $0x68] sm:$0xff] }
  0x13   :  { %912 = vmatmul.mubr.msk.f32.gmra.mrb[2].mxu0 %vm82_vm1, %v42_v26  ;;  %v213_v26 = vld [vmem:[%s1463_s3 + $0x70] sm:$0xff] }
  0x14   :  { %251 = vperm.xlu0 %1079, %v218_v27   ;;  %v552_v27 = vld [vmem:[%s1464_s5] sm:$0xff] }
  0x15   :  { %256 = vperm.xlu1 %1080, %v219_v28   ;;  %997 = vmatprep.mubr.msk.f32.mxu0 %vm580_vm6, %v552_v27 }
  0x18   :  { %261 = vperm.xlu0 %1079, %v220_v29  }
  0x19   :  { %266 = vperm.xlu1 %1080, %v221_v30  }
  0x1c   :  { %271 = vperm.xlu0 %1079, %v222_v31  }
  0x1d   :  { %276 = vperm.xlu1 %1080, %v223_v32  }
  0x20   :  { %281 = vperm.xlu0 %1079, %v224_v33  }
  0x21   :  { %286 = vperm.xlu1 %1080, %v225_v34  }
  0x24   :  { %291 = vperm.xlu0 %1079, %v226_v35  }
  0x25   :  { %296 = vperm.xlu1 %1080, %v227_v36  }
  0x28   :  { %301 = vperm.xlu0 %1079, %v228_v37  }
  0x29   :  { %562 = vperm.xlu1 %1080, %v556_v38  }
  0x2c   :  { %567 = vperm.xlu0 %1079, %v557_v39  }
  0x2d   :  { %572 = vperm.xlu1 %1080, %v558_v40  }
  0x30   :  { %577 = vperm.xlu0 %1079, %v559_v41  }
  0x31   :  { %733 = vperm.xlu1 %1080, %v730_v42  }
  0x83   :  { %v50_v45 = vpop.permute.xlu0 %49  ;;  %v60_v46 = vpop.permute.xlu1 %59 }
  0x87   :  { %v55_v47 = vpop.permute.xlu0 %54 }
  0x88   :  { %v65_v53 = vpop.permute.xlu1 %64 }
  0x8b   :  { %v232_v28 = vpop.permute.xlu0 %231 }
  0x8c   :  { %v237_v33 = vpop.permute.xlu1 %236 }
  0x8f   :  { %v242_v38 = vpop.permute.xlu0 %241 }
  0xe2   :  { %v910_v48 = vpop.f32.mrb[0].mxu0 }
  0xe3   :  { %v170_v49 = vadd.f32 %v910_v48, %v55_v47  ;;  %v164_v50 = vpop.f32.mrb[1].mxu0 }
  0xe4   :  { %v165_v51 = vadd.f32 %v164_v50, %v50_v45  ;;  %v247_v45 = vpop.permute.xlu1 %246 }
  0xe5   :  { %v184_v52 = vmul.f32 0.5, %v170_v49 }
  0xe6   :  { %v183_v54 = vmul.f32 0.5, %v165_v51  ;;  %v913_v55 = vpop.f32.mrb[2].mxu0  ;;  %v252_v51 = vpop.permute.xlu0 %251 }
  0xe7   :  { %1081 = vtanh.f32 %v184_v52  ;;  %v180_v56 = vadd.f32 %v913_v55, %v65_v53  ;;  %v174_v57 = vpop.f32.mrb[3].mxu0 }
  0xe8   :  { %1083 = vtanh.f32 %v183_v54  ;;  %v175_v58 = vadd.f32 %v174_v57, %v60_v46 }
  0xe9   :  { %v186_v59 = vmul.f32 0.5, %v180_v56 }
  0xea   :  { %v185_v60 = vmul.f32 0.5, %v175_v58  ;;  %v257_v58 = vpop.permute.xlu1 %256 }
  0xeb   :  { %1085 = vtanh.f32 %v186_v59 }
  0xec   :  { %1087 = vtanh.f32 %v185_v60 }
  0xf1   :  { %v1082_v61 = vpop.eup %1081 }
  0xf2   :  { %v1084_v62 = vpop.eup %1083  ;;  %v192_v63 = vmul.f32 0.5, %v1082_v61 }
  0xf3   :  { %v191_v1 = vmul.f32 0.5, %v1084_v62 }
  0xf4   :  { %v1308_v2 = vadd.f32 0.5, %v192_v63 }
  0xf5   :  { %v1086_v3 = vpop.eup %1085  ;;  %v1310_v4 = vadd.f32 0.5, %v191_v1 }
  0xf6   :  { %v1088_v5 = vpop.eup %1087  ;;  %v194_v6 = vmul.f32 0.5, %v1086_v3 }
  0xf7   :  { %v193_v7 = vmul.f32 0.5, %v1088_v5  ;;  %v1031_v8 = vpack.c.bf16 %v1308_v2, %v1310_v4 }
  0xf8   :  { %v1314_v9 = vadd.f32 0.5, %v194_v6  ;;  %v262_v6 = vpop.permute.xlu0 %261 }
  0xf9   :  { %v1316_v10 = vadd.f32 0.5, %v193_v7  ;;  %1032 = vmatpush3.bf16.msra.mxu1 %v1031_v8 }
  0xfa   :  { %1033 = vmatprep.subr.bf16.mxu1 %v1137_v43 }
  0xfb   :  { %v1034_v11 = vpack.c.bf16 %v1314_v9, %v1316_v10 }
  0xfd   :  { %1036 = vmatpush3.bf16.msk.msra.mxu1 %vm1219_vm4, %v1034_v11 }
 0x100   :  { %923 = vmatmul.mubr.msk.f32.vlgmr.msra.gmra.mrb[0].mxu1 %vm82_vm1, %v199_v12 }
 0x101   :  { %925 = vmatprep.mubr.msk.f32.mxu1 %vm1138_vm5, %v1139_v44 }
 0x104   :  { %926 = vmatmul.mubr.msk.f32.gmra.mrb[2].mxu1 %vm82_vm1, %v200_v13 }
 0x105   :  { %928 = vmatprep.mubr.msk.f32.mxu1 %vm1138_vm5, %v1139_v44 }
 0x108   :  { %929 = vmatmul.mubr.msk.f32.gmra.mrb[4].mxu1 %vm82_vm1, %v201_v14 }
 0x109   :  { %931 = vmatprep.mubr.msk.f32.mxu1 %vm1138_vm5, %v1139_v44 }
 0x10c   :  { %932 = vmatmul.mubr.msk.f32.gmra.mrb[6].mxu1 %vm82_vm1, %v202_v15 }
 0x10d   :  { %934 = vmatprep.mubr.msk.f32.mxu1 %vm1138_vm5, %v1139_v44 }
 0x110   :  { %935 = vmatmul.mubr.msk.f32.gmra.mrb[8].mxu1 %vm82_vm1, %v203_v16  ;;  %v267_v16 = vpop.permute.xlu1 %266 }
 0x111   :  { %937 = vmatprep.mubr.msk.f32.mxu1 %vm1138_vm5, %v1139_v44 }
 0x114   :  { %938 = vmatmul.mubr.msk.f32.gmra.mrb[10].mxu1 %vm82_vm1, %v204_v17 }
 0x115   :  { %940 = vmatprep.mubr.msk.f32.mxu1 %vm1138_vm5, %v1139_v44 }
 0x118   :  { %941 = vmatmul.mubr.msk.f32.gmra.mrb[12].mxu1 %vm82_vm1, %v205_v18 }
 0x119   :  { %943 = vmatprep.mubr.msk.f32.mxu1 %vm1138_vm5, %v1139_v44 }
 0x11c   :  { %944 = vmatmul.mubr.msk.f32.gmra.mrb[14].mxu1 %vm82_vm1, %v206_v19 }
 0x11d   :  { %946 = vmatprep.mubr.msk.f32.mxu1 %vm1138_vm5, %v1139_v44 }
 0x120   :  { %947 = vmatmul.mubr.msk.f32.gmra.mrb[16].mxu1 %vm82_vm1, %v207_v20 }
 0x121   :  { %949 = vmatprep.mubr.msk.f32.mxu1 %vm1138_vm5, %v1139_v44 }
 0x124   :  { %950 = vmatmul.mubr.msk.f32.gmra.mrb[18].mxu1 %vm82_vm1, %v208_v21 }
 0x125   :  { %952 = vmatprep.mubr.msk.f32.mxu1 %vm1138_vm5, %v1139_v44 }
 0x128   :  { %953 = vmatmul.mubr.msk.f32.gmra.mrb[20].mxu1 %vm82_vm1, %v209_v22 }
 0x129   :  { %955 = vmatprep.mubr.msk.f32.mxu1 %vm1138_vm5, %v1139_v44 }
 0x12c   :  { %956 = vmatmul.mubr.msk.f32.gmra.mrb[22].mxu1 %vm82_vm1, %v210_v23 }
 0x12d   :  { %958 = vmatprep.mubr.msk.f32.mxu1 %vm1138_vm5, %v1139_v44 }
 0x130   :  { %959 = vmatmul.mubr.msk.f32.gmra.mrb[24].mxu1 %vm82_vm1, %v211_v24 }
 0x131   :  { %961 = vmatprep.mubr.msk.f32.mxu1 %vm1138_vm5, %v1139_v44 }
 0x134   :  { %962 = vmatmul.mubr.msk.f32.gmra.mrb[26].mxu1 %vm82_vm1, %v212_v25  ;;  %v272_v25 = vpop.permute.xlu0 %271 }
 0x135   :  { %964 = vmatprep.mubr.msk.f32.mxu1 %vm1138_vm5, %v1139_v44 }
 0x138   :  { %965 = vmatmul.mubr.msk.f32.gmra.mrb[28].mxu1 %vm82_vm1, %v213_v26 }
 0x1d3   :  { %v418_v29 = vpop.f32.mrb[0].mxu1 }
 0x1d4   :  { %v419_v30 = vadd.f32 %v418_v29, %v232_v28  ;;  %v924_v31 = vpop.f32.mrb[1].mxu1 }
 0x1d6   :  { %v492_v32 = vmul.f32 0.5, %v419_v30 }
 0x1d7   :  { %v423_v34 = vpop.f32.mrb[2].mxu1 }
 0x1d8   :  { %1089 = vtanh.f32 %v492_v32  ;;  %v424_v35 = vadd.f32 %v423_v34, %v237_v33  ;;  %v927_v36 = vpop.f32.mrb[3].mxu1  ;;  %v277_v33 = vpop.permute.xlu1 %276 }
 0x1da   :  { %v493_v37 = vmul.f32 0.5, %v424_v35 }
 0x1db   :  { %v428_v39 = vpop.f32.mrb[4].mxu1 }
 0x1dc   :  { %1091 = vtanh.f32 %v493_v37  ;;  %v429_v40 = vadd.f32 %v428_v39, %v242_v38  ;;  %v930_v41 = vpop.f32.mrb[5].mxu1 }
 0x1de   :  { %v494_v42 = vmul.f32 0.5, %v429_v40 }
 0x1df   :  { %v433_v46 = vpop.f32.mrb[6].mxu1 }
 0x1e0   :  { %1093 = vtanh.f32 %v494_v42  ;;  %v434_v47 = vadd.f32 %v433_v46, %v247_v45  ;;  %v933_v48 = vpop.f32.mrb[7].mxu1  ;;  %v282_v42 = vpop.permute.xlu0 %281 }
 0x1e2   :  { %v1090_v49 = vpop.eup %1089  ;;  %v495_v50 = vmul.f32 0.5, %v434_v47 }
 0x1e3   :  { %v438_v52 = vpop.f32.mrb[8].mxu1  ;;  %v522_v55 = vmul.f32 0.5, %v1090_v49 }
 0x1e4   :  { %1095 = vtanh.f32 %v495_v50  ;;  %v439_v53 = vadd.f32 %v438_v52, %v252_v51  ;;  %v936_v54 = vpop.f32.mrb[9].mxu1  ;;  %v287_v52 = vpop.permute.xlu1 %286 }
 0x1e5   :  { %v537_v63 = vadd.f32 0.5, %v522_v55 }
 0x1e6   :  { %v1092_v56 = vpop.eup %1091  ;;  %v496_v57 = vmul.f32 0.5, %v439_v53 }
 0x1e7   :  { %v523_v59 = vmul.f32 0.5, %v1092_v56  ;;  %v443_v60 = vpop.f32.mrb[10].mxu1 }
 0x1e8   :  { %1097 = vtanh.f32 %v496_v57  ;;  %v444_v61 = vadd.f32 %v443_v60, %v257_v58  ;;  %v939_v62 = vpop.f32.mrb[11].mxu1 }
 0x1e9   :  { %v538_v1 = vadd.f32 0.5, %v523_v59 }
 0x1ea   :  { %v1094_v3 = vpop.eup %1093  ;;  %v497_v5 = vmul.f32 0.5, %v444_v61  ;;  %v292_v61 = vpop.permute.xlu0 %291 }
 0x1eb   :  { %v448_v7 = vpop.f32.mrb[12].mxu1  ;;  %v1037_v8 = vpack.c.bf16 %v538_v1, %v537_v63  ;;  %v524_v13 = vmul.f32 0.5, %v1094_v3 }
 0x1ec   :  { %1099 = vtanh.f32 %v497_v5  ;;  %v449_v11 = vadd.f32 %v448_v7, %v262_v6  ;;  %v942_v12 = vpop.f32.mrb[13].mxu1 }
 0x1ed   :  { %1038 = vmatprep.subr.bf16.mxu0 %v1037_v8  ;;  %v539_v21 = vadd.f32 0.5, %v524_v13 }
 0x1ee   :  { %v1096_v14 = vpop.eup %1095  ;;  %v498_v15 = vmul.f32 0.5, %v449_v11  ;;  %1040 = vmatpush3.bf16.msra.mxu0 %v1037_v8  ;;  %v297_v8 = vpop.permute.xlu1 %296 }
 0x1ef   :  { %v525_v17 = vmul.f32 0.5, %v1096_v14  ;;  %v453_v18 = vpop.f32.mrb[14].mxu1 }
 0x1f0   :  { %1101 = vtanh.f32 %v498_v15  ;;  %v454_v19 = vadd.f32 %v453_v18, %v267_v16  ;;  %v945_v20 = vpop.f32.mrb[15].mxu1 }
 0x1f1   :  { %v540_v22 = vadd.f32 0.5, %v525_v17 }
 0x1f2   :  { %v1098_v23 = vpop.eup %1097  ;;  %v499_v24 = vmul.f32 0.5, %v454_v19  ;;  %v302_v19 = vpop.permute.xlu0 %301 }
 0x1f3   :  { %v458_v26 = vpop.f32.mrb[16].mxu1  ;;  %v1041_v27 = vpack.c.bf16 %v540_v22, %v539_v21  ;;  %v526_v30 = vmul.f32 0.5, %v1098_v23 }
 0x1f4   :  { %1103 = vtanh.f32 %v499_v24  ;;  %v459_v28 = vadd.f32 %v458_v26, %v272_v25  ;;  %v948_v29 = vpop.f32.mrb[17].mxu1 }
 0x1f5   :  { %1042 = vmatprep.subr.bf16.mxu0 %v1041_v27  ;;  %v541_v38 = vadd.f32 0.5, %v526_v30 }
 0x1f6   :  { %v1100_v31 = vpop.eup %1099  ;;  %v500_v32 = vmul.f32 0.5, %v459_v28  ;;  %1044 = vmatpush3.bf16.msra.mxu0 %v1041_v27 }
 0x1f7   :  { %v527_v34 = vmul.f32 0.5, %v1100_v31  ;;  %v463_v35 = vpop.f32.mrb[18].mxu1 }
 0x1f8   :  { %1105 = vtanh.f32 %v500_v32  ;;  %v464_v36 = vadd.f32 %v463_v35, %v277_v33  ;;  %v951_v37 = vpop.f32.mrb[19].mxu1 }
 0x1f9   :  { %v542_v39 = vadd.f32 0.5, %v527_v34 }
 0x1fa   :  { %v1102_v40 = vpop.eup %1101  ;;  %v501_v41 = vmul.f32 0.5, %v464_v36 }
 0x1fb   :  { %v468_v45 = vpop.f32.mrb[20].mxu1  ;;  %v1045_v46 = vpack.c.bf16 %v542_v39, %v541_v38  ;;  %v528_v49 = vmul.f32 0.5, %v1102_v40 }
 0x1fc   :  { %1107 = vtanh.f32 %v501_v41  ;;  %v469_v47 = vadd.f32 %v468_v45, %v282_v42  ;;  %v954_v48 = vpop.f32.mrb[21].mxu1  ;;  %v553_v41 = vld [vmem:[%s1464_s5 + $0x8] sm:$0xff]  ;;  %v554_v42 = vld [vmem:[%s1464_s5 + $0x10] sm:$0xff]  ;;  %v555_v45 = vld [vmem:[%s1464_s5 + $0x18] sm:$0x7] }
 0x1fd   :  { %1046 = vmatprep.subr.bf16.mxu0 %v1045_v46  ;;  %v543_v57 = vadd.f32 0.5, %v528_v49 }
 0x1fe   :  { %v1104_v50 = vpop.eup %1103  ;;  %v502_v51 = vmul.f32 0.5, %v469_v47  ;;  %1048 = vmatpush3.bf16.msra.mxu0 %v1045_v46  ;;  %v32_v46 = vld [vmem:[%s1457_s0] sm:$0xff]  ;;  %v33_v47 = vld [vmem:[%s1457_s0 + $0x8] sm:$0xff] }
 0x1ff   :  { %v529_v53 = vmul.f32 0.5, %v1104_v50  ;;  %v473_v54 = vpop.f32.mrb[22].mxu1  ;;  %v682_v48 = vmul.f32 0.5, %v32_v46  ;;  %v683_v49 = vmul.f32 0.5, %v33_v47  ;;  %v729_v46 = vld [vmem:[%s1465_s7] sm:$0x3f] }
 0x200   :  { %1109 = vtanh.f32 %v502_v51  ;;  %v474_v55 = vadd.f32 %v473_v54, %v287_v52  ;;  %v957_v56 = vpop.f32.mrb[23].mxu1 }
 0x201   :  { %v544_v58 = vadd.f32 0.5, %v529_v53 }
 0x202   :  { %v1106_v59 = vpop.eup %1105  ;;  %v503_v60 = vmul.f32 0.5, %v474_v55 }
 0x203   :  { %v478_v62 = vpop.f32.mrb[24].mxu1  ;;  %v1049_v63 = vpack.c.bf16 %v544_v58, %v543_v57  ;;  %v530_v5 = vmul.f32 0.5, %v1106_v59  ;;  %v568_v57 = vpop.permute.xlu0 %567  ;;  %v34_v58 = vld [vmem:[%s1457_s0 + $0x10] sm:$0xff] }
 0x204   :  { %1111 = vtanh.f32 %v503_v60  ;;  %v479_v1 = vadd.f32 %v478_v62, %v292_v61  ;;  %v960_v3 = vpop.f32.mrb[25].mxu1  ;;  %v563_v59 = vpop.permute.xlu1 %562  ;;  %v685_v60 = vmul.f32 0.5, %v1193_v0 }
 0x205   :  { %1050 = vmatprep.subr.bf16.mxu0 %v1049_v63  ;;  %v545_v15 = vadd.f32 0.5, %v530_v5 }
 0x206   :  { %v1108_v6 = vpop.eup %1107  ;;  %v504_v7 = vmul.f32 0.5, %v479_v1  ;;  %1052 = vmatpush3.bf16.msra.mxu0 %v1049_v63  ;;  %v684_v1 = vmul.f32 0.5, %v34_v58 }
 0x207   :  { %v531_v11 = vmul.f32 0.5, %v1108_v6  ;;  %v483_v12 = vpop.f32.mrb[26].mxu1  ;;  %v578_v6 = vpop.permute.xlu0 %577 }
 0x208   :  { %1113 = vtanh.f32 %v504_v7  ;;  %v484_v13 = vadd.f32 %v483_v12, %v297_v8  ;;  %v963_v14 = vpop.f32.mrb[27].mxu1 }
 0x209   :  { %v546_v16 = vadd.f32 0.5, %v531_v11  ;;  %v573_v11 = vpop.permute.xlu1 %572 }
 0x20a   :  { %v1110_v17 = vpop.eup %1109  ;;  %v505_v18 = vmul.f32 0.5, %v484_v13 }
 0x20b   :  { %v488_v20 = vpop.f32.mrb[28].mxu1  ;;  %v1053_v21 = vpack.c.bf16 %v546_v16, %v545_v15  ;;  %v532_v24 = vmul.f32 0.5, %v1110_v17 }
 0x20c   :  { %1115 = vtanh.f32 %v505_v18  ;;  %v489_v22 = vadd.f32 %v488_v20, %v302_v19  ;;  %v966_v23 = vpop.f32.mrb[29].mxu1 }
 0x20d   :  { %1054 = vmatprep.subr.bf16.mxu0 %v1053_v21  ;;  %v547_v28 = vadd.f32 0.5, %v532_v24  ;;  %v734_v47 = vpop.permute.xlu1 %733 }
 0x20e   :  { %v1112_v25 = vpop.eup %1111  ;;  %v506_v26 = vmul.f32 0.5, %v489_v22  ;;  %1056 = vmatpush3.bf16.msra.mxu0 %v1053_v21 }
 0x20f   :  { %v533_v27 = vmul.f32 0.5, %v1112_v25 }
 0x210   :  { %1117 = vtanh.f32 %v506_v26 }
 0x211   :  { %v548_v29 = vadd.f32 0.5, %v533_v27  ;;  %1119 = vtanh.f32 %v682_v48 }
 0x212   :  { %v1114_v30 = vpop.eup %1113  ;;  %1121 = vtanh.f32 %v683_v49 }
 0x213   :  { %v1057_v31 = vpack.c.bf16 %v548_v29, %v547_v28  ;;  %v534_v32 = vmul.f32 0.5, %v1114_v30  ;;  %1123 = vtanh.f32 %v685_v60 }
 0x214   :  { %1125 = vtanh.f32 %v684_v1 }
 0x215   :  { %1058 = vmatprep.subr.bf16.mxu0 %v1057_v31  ;;  %v549_v35 = vadd.f32 0.5, %v534_v32 }
 0x216   :  { %v1116_v33 = vpop.eup %1115  ;;  %1060 = vmatpush3.bf16.msra.mxu0 %v1057_v31 }
 0x217   :  { %v535_v34 = vmul.f32 0.5, %v1116_v33 }
 0x219   :  { %v550_v36 = vadd.f32 0.5, %v535_v34 }
 0x21a   :  { %v1118_v37 = vpop.eup %1117 }
 0x21b   :  { %v536_v38 = vmul.f32 0.5, %v1118_v37  ;;  %v1061_v39 = vpack.c.bf16 %v550_v36, %v549_v35  ;;  %v1120_v50 = vpop.eup %1119 }
 0x21c   :  { %v1122_v51 = vpop.eup %1121  ;;  %v690_v52 = vmul.f32 0.5, %v1120_v50 }
 0x21d   :  { %1062 = vmatprep.subr.bf16.mxu0 %v1061_v39  ;;  %v551_v40 = vadd.f32 0.5, %v536_v38  ;;  %v691_v53 = vmul.f32 0.5, %v1122_v51  ;;  %v1124_v19 = vpop.eup %1123 }
 0x21e   :  { %1064 = vmatpush3.bf16.msra.mxu0 %v1061_v39  ;;  %v694_v54 = vadd.f32 0.5, %v690_v52  ;;  %v693_v21 = vmul.f32 0.5, %v1124_v19 }
 0x21f   :  { %995 = vmatprep.subr.mxu0 %v551_v40  ;;  %v695_v55 = vadd.f32 0.5, %v691_v53 }
 0x220   :  { %v697_v28 = vadd.f32 0.5, %v693_v21 }
 0x221   :  { %v1066_v56 = vpack.c.bf16 %v695_v55, %v694_v54 }
 0x222   :  { %996 = vmatpush3.msra.mxu0 %v551_v40 }
 0x223   :  { %998 = vmatmul.mubr.msk.f32.vlgmr.msra.gmra.mrb[4].mxu0 %vm580_vm6, %v553_v41  ;;  %1065 = vmatprep.subr.bf16.mxu0 %v1137_v43 }
 0x224   :  { %1000 = vmatprep.mubr.msk.f32.mxu0 %vm580_vm6, %v554_v42  ;;  %1067 = vmatpush3.bf16.msra.mxu0 %v1066_v56 }
 0x225   :  { %1068 = vmatprep.subr.bf16.mxu0 %v1137_v43 }
 0x227   :  { %1001 = vmatmul.mubr.msk.f32.gmra.mrb[6].mxu0 %vm580_vm6, %v555_v45 }
 0x228   :  { %1017 = vmatprep.mubr.msk.f32.mxu0 %vm1138_vm5, %v1139_v44 }
 0x2f6   :  { %v999_v61 = vpop.f32.mrb[4].mxu0 }
 0x2f7   :  { %v665_v62 = vadd.f32 %v999_v61, %v568_v57  ;;  %v659_v63 = vpop.f32.mrb[5].mxu0 }
 0x2f8   :  { %v660_v3 = vadd.f32 %v659_v63, %v563_v59 }
 0x2f9   :  { %v679_v5 = vadd.f32 %v665_v62, %v1308_v2 }
 0x2fa   :  { %v678_v7 = vadd.f32 %v660_v3, %v1310_v4  ;;  %v1002_v8 = vpop.f32.mrb[6].mxu0  ;;  %v1126_v4 = vpop.eup %1125 }
 0x2fb   :  { %v699_v12 = vmul.f32 0.5, %v679_v5  ;;  %v675_v13 = vadd.f32 %v1002_v8, %v578_v6  ;;  %v669_v14 = vpop.f32.mrb[7].mxu0  ;;  %v692_v24 = vmul.f32 0.5, %v1126_v4 }
 0x2fc   :  { %v698_v15 = vmul.f32 0.5, %v678_v7  ;;  %v670_v16 = vadd.f32 %v669_v14, %v573_v11 }
 0x2fd   :  { %1127 = vtanh.f32 %v699_v12  ;;  %v681_v0 = vadd.f32 %v675_v13, %v1314_v9 }
 0x2fe   :  { %1129 = vtanh.f32 %v698_v15  ;;  %v680_v17 = vadd.f32 %v670_v16, %v1316_v10  ;;  %v696_v10 = vadd.f32 0.5, %v692_v24 }
 0x2ff   :  { %v701_v18 = vmul.f32 0.5, %v681_v0 }
 0x300   :  { %v700_v2 = vmul.f32 0.5, %v680_v17 }
 0x301   :  { %1131 = vtanh.f32 %v701_v18 }
 0x302   :  { %1133 = vtanh.f32 %v700_v2 }
 0x307   :  { %v1128_v20 = vpop.eup %1127 }
 0x308   :  { %v1130_v22 = vpop.eup %1129  ;;  %v707_v23 = vmul.f32 0.5, %v1128_v20 }
 0x309   :  { %v706_v25 = vmul.f32 0.5, %v1130_v22 }
 0x30a   :  { %v711_v26 = vadd.f32 0.5, %v707_v23 }
 0x30b   :  { %v1132_v27 = vpop.eup %1131  ;;  %v710_v29 = vadd.f32 0.5, %v706_v25 }
 0x30c   :  { %v1134_v9 = vpop.eup %1133  ;;  %v719_v30 = vrot.slane %v711_v26, 5  ;;  %v709_v31 = vmul.f32 0.5, %v1132_v27 }
 0x30d   :  { %v718_v32 = vrot.slane %v710_v29, 5  ;;  %v708_v33 = vmul.f32 0.5, %v1134_v9 }
 0x30e   :  { %v713_v34 = vadd.f32 0.5, %v709_v31 }
 0x30f   :  { %v712_v35 = vadd.f32 0.5, %v708_v33  ;;  %v728_v36 = vsel %vm95_vm2, %v697_v28, %v718_v32  ;;  %v720_v37 = vsel %vm95_vm2, %v718_v32, %v719_v30 }
 0x310   :  { %v723_v38 = vrot.slane %v713_v34, 5  ;;  %v1069_v39 = vpack.c.bf16 %v728_v36, %v696_v10 }
 0x311   :  { %v721_v40 = vrot.slane %v712_v35, 5 }
 0x312   :  { %1070 = vmatpush3.bf16.msra.mxu0 %v1069_v39 }
 0x313   :  { %1071 = vmatprep.subr.bf16.mxu0 %v1137_v43  ;;  %v722_v41 = vsel %vm95_vm2, %v719_v30, %v721_v40  ;;  %v724_v42 = vsel %vm95_vm2, %v721_v40, %v723_v38 }
 0x314   :  { %v1072_v45 = vpack.c.bf16 %v722_v41, %v720_v37 }
 0x316   :  { %1073 = vmatpush3.bf16.msra.mxu0 %v1072_v45 }
 0x317   :  { %1015 = vmatprep.subr.mxu0 %v1139_v44 }
 0x31a   :  { %1016 = vmatpush3.msk.msra.mxu0 %vm740_vm7, %v724_v42 }
 0x31b   :  { %1018 = vmatmul.mubr.msk.f32.vlgmr.msra.gmra.mrb[8].mxu0 %vm736_vm8, %v729_v46 }
 0x3ee   :  { %v809_v48 = vpop.f32.mrb[8].mxu0 }
 0x3ef   :  { %v810_v43 = vadd.f32 %v809_v48, %v734_v47  ;;  %v1019_v49 = vpop.f32.mrb[9].mxu0 }
 0x3f1   :  { %814 = vst.msk [vmem:[%s1466_s9] sm:$0x3f] %vm813_vm9, %v810_v43 }

</bundles_post_ra>
